<compile_context>
chip_gen: v7x
topology: tpu7x:2x2x1
jax: 0.10.0
libtpu: 0.0.40
codegen_flags: <defaults>
</compile_context>

<pallas_src>
import functools

import jax
import jax.numpy as jnp
from jax.experimental import pallas as pl
from jax.experimental.pallas import tpu as pltpu


def _edge_merge_kernel(x_ref, up_ref, dn_ref, w_ref, b_ref, o_ref, *, up_row, mxu):
    """One (batch, row-tile) step: y = x + lap(x); out[co] = b[co] + sum_ci w[co,ci]*y[ci]."""
    i = pl.program_id(1)
    n_row_tiles = pl.num_programs(1)
    _, C, TH, W = x_ref.shape

    x = x_ref[0].astype(jnp.float32)                     # (C, TH, W)

    # Halo rows from the neighbouring tiles.  At the image top / bottom the
    # 3x3 conv pads with zeros, so the halo contribution is masked to 0 there.
    not_first = (i > 0).astype(jnp.float32)
    not_last = (i < n_row_tiles - 1).astype(jnp.float32)
    uh = up_ref[0][:, up_row:up_row + 1, :].astype(jnp.float32) * not_first   # (C, 1, W)
    dh = dn_ref[0][:, 0:1, :].astype(jnp.float32) * not_last                  # (C, 1, W)

    # Shifted neighbours, built from the resident tile (no scratch copy).
    if TH > 1:
        up = jnp.concatenate([uh, x[:, :TH - 1, :]], axis=1)
        down = jnp.concatenate([x[:, 1:, :], dh], axis=1)
    else:
        up, down = uh, dh
    zcol = jnp.zeros((C, TH, 1), jnp.float32)
    if W > 1:
        left = jnp.concatenate([zcol, x[:, :, :W - 1]], axis=2)
        right = jnp.concatenate([x[:, :, 1:], zcol], axis=2)
    else:
        left, right = zcol, zcol

    # x + laplacian(x) == 5*x - up - down - left - right
    y = 5.0 * x - (up + down) - (left + right)           # (C, TH, W), f32

    if not mxu:
        # Small C: 1x1 conv as C*C VPU FMAs with scalar weights from SMEM.
        # Stays f32 end-to-end; keeps the fast (TH, W) lane layout.
        for co in range(C):
            acc = y[0] * w_ref[co, 0]
            for ci in range(1, C):
                acc = acc + y[ci] * w_ref[co, ci]
            o_ref[0, co] = (acc + b_ref[co]).astype(o_ref.dtype)
    else:
        # Large C: bf16 MXU matmul (f32 accumulation), weight resident in VMEM.
        yb = y.reshape(C, TH * W).astype(jnp.bfloat16)
        out = jnp.dot(w_ref[...].astype(jnp.bfloat16), yb,
                      preferred_element_type=jnp.float32)
        out = out + b_ref[...]                            # (C, 1) bias broadcast
        o_ref[0] = out.reshape(C, TH, W).astype(o_ref.dtype)


def _pick_row_tile(H, W, C, *, target_block_bytes=2 << 20, vmem_budget_bytes=40 << 20):
    """Rows per grid step: aim for ~target_block_bytes of input per block while
    keeping ~12 live block-sized f32 buffers (double-buffered in/out + stencil
    temporaries) under a v7x-safe VMEM budget (64 MiB physical there)."""
    per_row_bytes = max(C * W * 4, 1)                     # f32 compute temporaries
    budget = min(target_block_bytes, vmem_budget_bytes // 12)
    th = max(8, budget // per_row_bytes)
    th = int(th) // 8 * 8                                 # row-block dim must be 8-aligned
    if th >= H:
        return H                                          # whole image in one row tile
    for cand in range(th, 7, -8):                         # prefer a divisor of H (no pad)
        if H % cand == 0:
            return cand
    return th                                             # ragged H -> bottom pad


def edge_enhancement_forward(params, x_nchw, *, target_block_bytes=2 << 20):
    """EdgeEnhancementBlock forward.  x_nchw: (B, C, H, W) -> (B, C, H, W)."""
    w = params["merge_w"]                                 # (C, C, 1, 1), torch Conv2d layout
    b = params["merge_b"]                                 # (C,)
    B, C, H, W = x_nchw.shape

    TH = _pick_row_tile(H, W, C, target_block_bytes=target_block_bytes)
    nH = pl.cdiv(H, TH)
    Hp = nH * TH

    x = x_nchw
    if Hp != H:
        # Only for ragged H: zero bottom rows so every row block is full.  The
        # extra output rows are sliced off below.
        x = jnp.pad(x, ((0, 0), (0, 0), (0, Hp - H), (0, 0)))

    # 1x1 conv parameters.  Small C -> SMEM scalars (VPU FMA path);
    # large C -> VMEM bf16 weight (MXU path).
    use_mxu = C > 32
    wmat = w.reshape(C, C)
    if use_mxu:
        w_in = wmat.astype(jnp.bfloat16)
        b_in = b.reshape(C, 1).astype(jnp.float32)
        w_spec = pl.BlockSpec((C, C), lambda bi, i: (0, 0))
        b_spec = pl.BlockSpec((C, 1), lambda bi, i: (0, 0))
    else:
        w_in = wmat.astype(jnp.float32)
        b_in = b.astype(jnp.float32)
        w_spec = pl.BlockSpec(memory_space=pltpu.MemorySpace.SMEM)
        b_spec = pl.BlockSpec(memory_space=pltpu.MemorySpace.SMEM)

    # Halo blocks: smallest legal row-block (8 rows, or full H for tiny images).
    HB = 8 if Hp >= 8 else Hp
    bpt = max(TH // HB, 1)                # HB-blocks per row tile (exact when nH > 1)
    up_row = (TH - 1) % HB if nH > 1 else 0
    last_blk = (Hp - HB) // HB

    def x_map(bi, i):
        return (bi, 0, i, 0)

    def up_map(bi, i):                    # block holding row i*TH - 1 (clamped; masked at i==0)
        return (bi, 0, jnp.maximum(i * bpt - 1, 0), 0)

    def dn_map(bi, i):                    # block holding row (i+1)*TH (clamped; masked at last i)
        return (bi, 0, jnp.minimum((i + 1) * bpt, last_blk), 0)

    kern = functools.partial(_edge_merge_kernel, up_row=up_row, mxu=use_mxu)

    block_bytes = C * TH * W * 4
    vmem_limit = int(min(96 << 20, max(32 << 20, 14 * block_bytes)))

    out = pl.pallas_call(
        kern,
        out_shape=jax.ShapeDtypeStruct((B, C, Hp, W), jnp.float32),
        grid_spec=pltpu.PrefetchScalarGridSpec(
            num_scalar_prefetch=0,
            grid=(B, nH),
            in_specs=[
                pl.BlockSpec((1, C, TH, W), x_map),       # main row tile
                pl.BlockSpec((1, C, HB, W), up_map),      # 8-row block above (halo)
                pl.BlockSpec((1, C, HB, W), dn_map),      # 8-row block below (halo)
                w_spec,                                   # merge weight
                b_spec,                                   # merge bias
            ],
            out_specs=pl.BlockSpec((1, C, TH, W), x_map),
        ),
        compiler_params=pltpu.CompilerParams(
            dimension_semantics=("parallel", "parallel"),
            vmem_limit_bytes=vmem_limit,
        ),
    )(x, x, x, w_in, b_in)

    if Hp != H:
        out = out[:, :, :H, :]
    return out


def edge_enhancement_reference(params, x_nchw):
    """Pure-JAX (XLA) f32 reference of the PyTorch module."""
    B, C, H, W = x_nchw.shape
    w2d = params["merge_w"].reshape(C, C).astype(jnp.float32)
    b = params["merge_b"].astype(jnp.float32)
    x = x_nchw.astype(jnp.float32)
    xp = jnp.pad(x, ((0, 0), (0, 0), (1, 1), (1, 1)))
    edges = (4.0 * x
             - xp[:, :, :-2, 1:-1]    # up
             - xp[:, :, 2:, 1:-1]     # down
             - xp[:, :, 1:-1, :-2]    # left
             - xp[:, :, 1:-1, 2:])    # right
    y = x + edges
    out = jnp.einsum("oc,bchw->bohw", w2d, y) + b[None, :, None, None]
    return out


def _run_and_check(params, x, **kwargs):
    fwd = jax.jit(functools.partial(edge_enhancement_forward, **kwargs))
    out = jax.block_until_ready(fwd(params, x))
    assert out.shape == x.shape, (out.shape, x.shape)
    assert bool(jnp.all(jnp.isfinite(out)))
    ref = edge_enhancement_reference(params, x)
    err = float(jnp.max(jnp.abs(out - ref)))
    scale = float(jnp.max(jnp.abs(ref)))
    # Small-C path is all-f32 -> only FMA-ordering differences vs the reference.
    assert err <= 1e-4 * max(1.0, scale), (err, scale)


if __name__ == "__main__":
    B, C, H, W = 2, 4, 16, 16
    key = jax.random.PRNGKey(0)
    kx, kw, kb = jax.random.split(key, 3)

    x = jax.random.normal(kx, (B, C, H, W), jnp.float32)
    params = dict(
        merge_w=jax.random.normal(kw, (C, C, 1, 1), jnp.float32) / jnp.sqrt(C),
        merge_b=0.1 * jax.random.normal(kb, (C,), jnp.float32),
    )

    # 1) Default tiling (whole image fits in one row tile per batch element).
    _run_and_check(params, x)

    # 2) Force multi-tile rows to exercise the 8-row halo blocks + boundary masks.
    _run_and_check(params, x, target_block_bytes=2048)            # TH = 8, nH = 2

    # 3) Ragged H (bottom-pad path) with multi-tile rows.
    x2 = jax.random.normal(kx, (B, C, 20, W), jnp.float32)
    _run_and_check(params, x2, target_block_bytes=2048)           # TH = 8, nH = 3, Hp = 24

    print("KERNEL_OK")
</pallas_src>

<mosaic_0001>
module attributes {stable_mosaic.version = 11 : i64} {
  func.func @_edge_merge_kernel(%arg0: i32, %arg1: i32, %arg2: memref<1x4x16x16xf32, #tpu.memory_space<vmem>>, %arg3: memref<1x4x8x16xf32, #tpu.memory_space<vmem>>, %arg4: memref<1x4x8x16xf32, #tpu.memory_space<vmem>>, %arg5: memref<4x4xf32, #tpu.memory_space<smem>>, %arg6: memref<4xf32, #tpu.memory_space<smem>>, %arg7: memref<1x4x16x16xf32, #tpu.memory_space<vmem>>) attributes {dimension_semantics = [#tpu.dimension_semantics<parallel>, #tpu.dimension_semantics<parallel>], iteration_bounds = array<i64: 2, 1>, scalar_prefetch = 0 : i64, scratch_operands = 0 : i64, tpu.core_type = #tpu.core_type<tc>, window_params = [{transform_indices = @transform_0, window_bounds = array<i64: 1, 4, 16, 16>}, {transform_indices = @transform_1, window_bounds = array<i64: 1, 4, 8, 16>}, {transform_indices = @transform_2, window_bounds = array<i64: 1, 4, 8, 16>}, {transform_indices = @transform_3, window_bounds = array<i64: 4, 4>}, {transform_indices = @transform_4, window_bounds = array<i64: 4>}, {transform_indices = @transform_5, window_bounds = array<i64: 1, 4, 16, 16>}]} {
    %c0 = arith.constant 0 : index
    %c0_0 = arith.constant 0 : index
    %c0_1 = arith.constant 0 : index
    %c0_2 = arith.constant 0 : index
    %0 = vector.load %arg2[%c0, %c0_0, %c0_1, %c0_2] : memref<1x4x16x16xf32, #tpu.memory_space<vmem>>, vector<1x4x16x16xf32>
    %1 = vector.shape_cast %0 : vector<1x4x16x16xf32> to vector<4x16x16xf32>
    %c0_i32 = arith.constant 0 : i32
    %2 = arith.cmpi sgt, %arg1, %c0_i32 : i32
    %3 = arith.extui %2 : i1 to i32
    %4 = arith.sitofp %3 : i32 to f32
    %c0_i32_3 = arith.constant 0 : i32
    %5 = arith.cmpi slt, %arg1, %c0_i32_3 : i32
    %6 = arith.extui %5 : i1 to i32
    %7 = arith.sitofp %6 : i32 to f32
    %c0_4 = arith.constant 0 : index
    %c0_5 = arith.constant 0 : index
    %c0_6 = arith.constant 0 : index
    %c0_7 = arith.constant 0 : index
    %8 = vector.load %arg3[%c0_4, %c0_5, %c0_6, %c0_7] : memref<1x4x8x16xf32, #tpu.memory_space<vmem>>, vector<1x4x8x16xf32>
    %9 = vector.shape_cast %8 : vector<1x4x8x16xf32> to vector<4x8x16xf32>
    %10 = vector.extract_strided_slice %9 {offsets = [0, 0, 0], sizes = [4, 1, 16], strides = [1, 1, 1]} : vector<4x8x16xf32> to vector<4x1x16xf32>
    %11 = vector.broadcast %4 : f32 to vector<4x1x16xf32>
    %12 = arith.mulf %10, %11 : vector<4x1x16xf32>
    %c0_8 = arith.constant 0 : index
    %c0_9 = arith.constant 0 : index
    %c0_10 = arith.constant 0 : index
    %c0_11 = arith.constant 0 : index
    %13 = vector.load %arg4[%c0_8, %c0_9, %c0_10, %c0_11] : memref<1x4x8x16xf32, #tpu.memory_space<vmem>>, vector<1x4x8x16xf32>
    %14 = vector.shape_cast %13 : vector<1x4x8x16xf32> to vector<4x8x16xf32>
    %15 = vector.extract_strided_slice %14 {offsets = [0, 0, 0], sizes = [4, 1, 16], strides = [1, 1, 1]} : vector<4x8x16xf32> to vector<4x1x16xf32>
    %16 = vector.broadcast %7 : f32 to vector<4x1x16xf32>
    %17 = arith.mulf %15, %16 : vector<4x1x16xf32>
    %18 = vector.extract_strided_slice %1 {offsets = [0, 0, 0], sizes = [4, 15, 16], strides = [1, 1, 1]} : vector<4x16x16xf32> to vector<4x15x16xf32>
    %19 = tpu.concatenate %12, %18 in 1 : vector<4x1x16xf32>, vector<4x15x16xf32> -> vector<4x16x16xf32>
    %20 = vector.extract_strided_slice %1 {offsets = [0, 1, 0], sizes = [4, 15, 16], strides = [1, 1, 1]} : vector<4x16x16xf32> to vector<4x15x16xf32>
    %21 = tpu.concatenate %20, %17 in 1 : vector<4x15x16xf32>, vector<4x1x16xf32> -> vector<4x16x16xf32>
    %cst = arith.constant 0.000000e+00 : f32
    %22 = vector.broadcast %cst : f32 to vector<4x16x1xf32>
    %23 = vector.extract_strided_slice %1 {offsets = [0, 0, 0], sizes = [4, 16, 15], strides = [1, 1, 1]} : vector<4x16x16xf32> to vector<4x16x15xf32>
    %24 = tpu.concatenate %22, %23 in 2 : vector<4x16x1xf32>, vector<4x16x15xf32> -> vector<4x16x16xf32>
    %25 = vector.extract_strided_slice %1 {offsets = [0, 0, 1], sizes = [4, 16, 15], strides = [1, 1, 1]} : vector<4x16x16xf32> to vector<4x16x15xf32>
    %26 = tpu.concatenate %25, %22 in 2 : vector<4x16x15xf32>, vector<4x16x1xf32> -> vector<4x16x16xf32>
    %cst_12 = arith.constant 5.000000e+00 : f32
    %27 = vector.broadcast %cst_12 : f32 to vector<4x16x16xf32>
    %28 = arith.mulf %27, %1 : vector<4x16x16xf32>
    %29 = arith.addf %19, %21 : vector<4x16x16xf32>
    %30 = arith.subf %28, %29 : vector<4x16x16xf32>
    %31 = arith.addf %24, %26 : vector<4x16x16xf32>
    %32 = arith.subf %30, %31 : vector<4x16x16xf32>
    %33 = vector.extract_strided_slice %32 {offsets = [0, 0, 0], sizes = [1, 16, 16], strides = [1, 1, 1]} : vector<4x16x16xf32> to vector<1x16x16xf32>
    %34 = vector.shape_cast %33 : vector<1x16x16xf32> to vector<16x16xf32>
    %c0_13 = arith.constant 0 : index
    %c0_14 = arith.constant 0 : index
    %35 = memref.load %arg5[%c0_13, %c0_14] : memref<4x4xf32, #tpu.memory_space<smem>>
    %36 = vector.broadcast %35 : f32 to vector<16x16xf32>
    %37 = arith.mulf %34, %36 : vector<16x16xf32>
    %38 = vector.extract_strided_slice %32 {offsets = [1, 0, 0], sizes = [1, 16, 16], strides = [1, 1, 1]} : vector<4x16x16xf32> to vector<1x16x16xf32>
    %39 = vector.shape_cast %38 : vector<1x16x16xf32> to vector<16x16xf32>
    %c0_15 = arith.constant 0 : index
    %c1 = arith.constant 1 : index
    %40 = memref.load %arg5[%c0_15, %c1] : memref<4x4xf32, #tpu.memory_space<smem>>
    %41 = vector.broadcast %40 : f32 to vector<16x16xf32>
    %42 = arith.mulf %39, %41 : vector<16x16xf32>
    %43 = arith.addf %37, %42 : vector<16x16xf32>
    %44 = vector.extract_strided_slice %32 {offsets = [2, 0, 0], sizes = [1, 16, 16], strides = [1, 1, 1]} : vector<4x16x16xf32> to vector<1x16x16xf32>
    %45 = vector.shape_cast %44 : vector<1x16x16xf32> to vector<16x16xf32>
    %c0_16 = arith.constant 0 : index
    %c2 = arith.constant 2 : index
    %46 = memref.load %arg5[%c0_16, %c2] : memref<4x4xf32, #tpu.memory_space<smem>>
    %47 = vector.broadcast %46 : f32 to vector<16x16xf32>
    %48 = arith.mulf %45, %47 : vector<16x16xf32>
    %49 = arith.addf %43, %48 : vector<16x16xf32>
    %50 = vector.extract_strided_slice %32 {offsets = [3, 0, 0], sizes = [1, 16, 16], strides = [1, 1, 1]} : vector<4x16x16xf32> to vector<1x16x16xf32>
    %51 = vector.shape_cast %50 : vector<1x16x16xf32> to vector<16x16xf32>
    %c0_17 = arith.constant 0 : index
    %c3 = arith.constant 3 : index
    %52 = memref.load %arg5[%c0_17, %c3] : memref<4x4xf32, #tpu.memory_space<smem>>
    %53 = vector.broadcast %52 : f32 to vector<16x16xf32>
    %54 = arith.mulf %51, %53 : vector<16x16xf32>
    %55 = arith.addf %49, %54 : vector<16x16xf32>
    %c0_18 = arith.constant 0 : index
    %56 = memref.load %arg6[%c0_18] : memref<4xf32, #tpu.memory_space<smem>>
    %57 = vector.broadcast %56 : f32 to vector<16x16xf32>
    %58 = arith.addf %55, %57 : vector<16x16xf32>
    %c0_19 = arith.constant 0 : index
    %c0_20 = arith.constant 0 : index
    %c0_21 = arith.constant 0 : index
    %c0_22 = arith.constant 0 : index
    %59 = vector.load %arg7[%c0_19, %c0_20, %c0_21, %c0_22] : memref<1x4x16x16xf32, #tpu.memory_space<vmem>>, vector<1x1x16x16xf32>
    %60 = vector.shape_cast %59 : vector<1x1x16x16xf32> to vector<16x16xf32>
    %61 = vector.shape_cast %58 : vector<16x16xf32> to vector<1x1x16x16xf32>
    tpu.vector_store %arg7[%c0_19, %c0_20, %c0_21, %c0_22], %61 {strides = array<i32>} : memref<1x4x16x16xf32, #tpu.memory_space<vmem>>, vector<1x1x16x16xf32>,
    %62 = vector.extract_strided_slice %32 {offsets = [0, 0, 0], sizes = [1, 16, 16], strides = [1, 1, 1]} : vector<4x16x16xf32> to vector<1x16x16xf32>
    %63 = vector.shape_cast %62 : vector<1x16x16xf32> to vector<16x16xf32>
    %c1_23 = arith.constant 1 : index
    %c0_24 = arith.constant 0 : index
    %64 = memref.load %arg5[%c1_23, %c0_24] : memref<4x4xf32, #tpu.memory_space<smem>>
    %65 = vector.broadcast %64 : f32 to vector<16x16xf32>
    %66 = arith.mulf %63, %65 : vector<16x16xf32>
    %67 = vector.extract_strided_slice %32 {offsets = [1, 0, 0], sizes = [1, 16, 16], strides = [1, 1, 1]} : vector<4x16x16xf32> to vector<1x16x16xf32>
    %68 = vector.shape_cast %67 : vector<1x16x16xf32> to vector<16x16xf32>
    %c1_25 = arith.constant 1 : index
    %c1_26 = arith.constant 1 : index
    %69 = memref.load %arg5[%c1_25, %c1_26] : memref<4x4xf32, #tpu.memory_space<smem>>
    %70 = vector.broadcast %69 : f32 to vector<16x16xf32>
    %71 = arith.mulf %68, %70 : vector<16x16xf32>
    %72 = arith.addf %66, %71 : vector<16x16xf32>
    %73 = vector.extract_strided_slice %32 {offsets = [2, 0, 0], sizes = [1, 16, 16], strides = [1, 1, 1]} : vector<4x16x16xf32> to vector<1x16x16xf32>
    %74 = vector.shape_cast %73 : vector<1x16x16xf32> to vector<16x16xf32>
    %c1_27 = arith.constant 1 : index
    %c2_28 = arith.constant 2 : index
    %75 = memref.load %arg5[%c1_27, %c2_28] : memref<4x4xf32, #tpu.memory_space<smem>>
    %76 = vector.broadcast %75 : f32 to vector<16x16xf32>
    %77 = arith.mulf %74, %76 : vector<16x16xf32>
    %78 = arith.addf %72, %77 : vector<16x16xf32>
    %79 = vector.extract_strided_slice %32 {offsets = [3, 0, 0], sizes = [1, 16, 16], strides = [1, 1, 1]} : vector<4x16x16xf32> to vector<1x16x16xf32>
    %80 = vector.shape_cast %79 : vector<1x16x16xf32> to vector<16x16xf32>
    %c1_29 = arith.constant 1 : index
    %c3_30 = arith.constant 3 : index
    %81 = memref.load %arg5[%c1_29, %c3_30] : memref<4x4xf32, #tpu.memory_space<smem>>
    %82 = vector.broadcast %81 : f32 to vector<16x16xf32>
    %83 = arith.mulf %80, %82 : vector<16x16xf32>
    %84 = arith.addf %78, %83 : vector<16x16xf32>
    %c1_31 = arith.constant 1 : index
    %85 = memref.load %arg6[%c1_31] : memref<4xf32, #tpu.memory_space<smem>>
    %86 = vector.broadcast %85 : f32 to vector<16x16xf32>
    %87 = arith.addf %84, %86 : vector<16x16xf32>
    %c0_32 = arith.constant 0 : index
    %c1_33 = arith.constant 1 : index
    %c0_34 = arith.constant 0 : index
    %c0_35 = arith.constant 0 : index
    %88 = vector.load %arg7[%c0_32, %c1_33, %c0_34, %c0_35] : memref<1x4x16x16xf32, #tpu.memory_space<vmem>>, vector<1x1x16x16xf32>
    %89 = vector.shape_cast %88 : vector<1x1x16x16xf32> to vector<16x16xf32>
    %90 = vector.shape_cast %87 : vector<16x16xf32> to vector<1x1x16x16xf32>
    tpu.vector_store %arg7[%c0_32, %c1_33, %c0_34, %c0_35], %90 {strides = array<i32>} : memref<1x4x16x16xf32, #tpu.memory_space<vmem>>, vector<1x1x16x16xf32>,
    %91 = vector.extract_strided_slice %32 {offsets = [0, 0, 0], sizes = [1, 16, 16], strides = [1, 1, 1]} : vector<4x16x16xf32> to vector<1x16x16xf32>
    %92 = vector.shape_cast %91 : vector<1x16x16xf32> to vector<16x16xf32>
    %c2_36 = arith.constant 2 : index
    %c0_37 = arith.constant 0 : index
    %93 = memref.load %arg5[%c2_36, %c0_37] : memref<4x4xf32, #tpu.memory_space<smem>>
    %94 = vector.broadcast %93 : f32 to vector<16x16xf32>
    %95 = arith.mulf %92, %94 : vector<16x16xf32>
    %96 = vector.extract_strided_slice %32 {offsets = [1, 0, 0], sizes = [1, 16, 16], strides = [1, 1, 1]} : vector<4x16x16xf32> to vector<1x16x16xf32>
    %97 = vector.shape_cast %96 : vector<1x16x16xf32> to vector<16x16xf32>
    %c2_38 = arith.constant 2 : index
    %c1_39 = arith.constant 1 : index
    %98 = memref.load %arg5[%c2_38, %c1_39] : memref<4x4xf32, #tpu.memory_space<smem>>
    %99 = vector.broadcast %98 : f32 to vector<16x16xf32>
    %100 = arith.mulf %97, %99 : vector<16x16xf32>
    %101 = arith.addf %95, %100 : vector<16x16xf32>
    %102 = vector.extract_strided_slice %32 {offsets = [2, 0, 0], sizes = [1, 16, 16], strides = [1, 1, 1]} : vector<4x16x16xf32> to vector<1x16x16xf32>
    %103 = vector.shape_cast %102 : vector<1x16x16xf32> to vector<16x16xf32>
    %c2_40 = arith.constant 2 : index
    %c2_41 = arith.constant 2 : index
    %104 = memref.load %arg5[%c2_40, %c2_41] : memref<4x4xf32, #tpu.memory_space<smem>>
    %105 = vector.broadcast %104 : f32 to vector<16x16xf32>
    %106 = arith.mulf %103, %105 : vector<16x16xf32>
    %107 = arith.addf %101, %106 : vector<16x16xf32>
    %108 = vector.extract_strided_slice %32 {offsets = [3, 0, 0], sizes = [1, 16, 16], strides = [1, 1, 1]} : vector<4x16x16xf32> to vector<1x16x16xf32>
    %109 = vector.shape_cast %108 : vector<1x16x16xf32> to vector<16x16xf32>
    %c2_42 = arith.constant 2 : index
    %c3_43 = arith.constant 3 : index
    %110 = memref.load %arg5[%c2_42, %c3_43] : memref<4x4xf32, #tpu.memory_space<smem>>
    %111 = vector.broadcast %110 : f32 to vector<16x16xf32>
    %112 = arith.mulf %109, %111 : vector<16x16xf32>
    %113 = arith.addf %107, %112 : vector<16x16xf32>
    %c2_44 = arith.constant 2 : index
    %114 = memref.load %arg6[%c2_44] : memref<4xf32, #tpu.memory_space<smem>>
    %115 = vector.broadcast %114 : f32 to vector<16x16xf32>
    %116 = arith.addf %113, %115 : vector<16x16xf32>
    %c0_45 = arith.constant 0 : index
    %c2_46 = arith.constant 2 : index
    %c0_47 = arith.constant 0 : index
    %c0_48 = arith.constant 0 : index
    %117 = vector.load %arg7[%c0_45, %c2_46, %c0_47, %c0_48] : memref<1x4x16x16xf32, #tpu.memory_space<vmem>>, vector<1x1x16x16xf32>
    %118 = vector.shape_cast %117 : vector<1x1x16x16xf32> to vector<16x16xf32>
    %119 = vector.shape_cast %116 : vector<16x16xf32> to vector<1x1x16x16xf32>
    tpu.vector_store %arg7[%c0_45, %c2_46, %c0_47, %c0_48], %119 {strides = array<i32>} : memref<1x4x16x16xf32, #tpu.memory_space<vmem>>, vector<1x1x16x16xf32>,
    %120 = vector.extract_strided_slice %32 {offsets = [0, 0, 0], sizes = [1, 16, 16], strides = [1, 1, 1]} : vector<4x16x16xf32> to vector<1x16x16xf32>
    %121 = vector.shape_cast %120 : vector<1x16x16xf32> to vector<16x16xf32>
    %c3_49 = arith.constant 3 : index
    %c0_50 = arith.constant 0 : index
    %122 = memref.load %arg5[%c3_49, %c0_50] : memref<4x4xf32, #tpu.memory_space<smem>>
    %123 = vector.broadcast %122 : f32 to vector<16x16xf32>
    %124 = arith.mulf %121, %123 : vector<16x16xf32>
    %125 = vector.extract_strided_slice %32 {offsets = [1, 0, 0], sizes = [1, 16, 16], strides = [1, 1, 1]} : vector<4x16x16xf32> to vector<1x16x16xf32>
    %126 = vector.shape_cast %125 : vector<1x16x16xf32> to vector<16x16xf32>
    %c3_51 = arith.constant 3 : index
    %c1_52 = arith.constant 1 : index
    %127 = memref.load %arg5[%c3_51, %c1_52] : memref<4x4xf32, #tpu.memory_space<smem>>
    %128 = vector.broadcast %127 : f32 to vector<16x16xf32>
    %129 = arith.mulf %126, %128 : vector<16x16xf32>
    %130 = arith.addf %124, %129 : vector<16x16xf32>
    %131 = vector.extract_strided_slice %32 {offsets = [2, 0, 0], sizes = [1, 16, 16], strides = [1, 1, 1]} : vector<4x16x16xf32> to vector<1x16x16xf32>
    %132 = vector.shape_cast %131 : vector<1x16x16xf32> to vector<16x16xf32>
    %c3_53 = arith.constant 3 : index
    %c2_54 = arith.constant 2 : index
    %133 = memref.load %arg5[%c3_53, %c2_54] : memref<4x4xf32, #tpu.memory_space<smem>>
    %134 = vector.broadcast %133 : f32 to vector<16x16xf32>
    %135 = arith.mulf %132, %134 : vector<16x16xf32>
    %136 = arith.addf %130, %135 : vector<16x16xf32>
    %137 = vector.extract_strided_slice %32 {offsets = [3, 0, 0], sizes = [1, 16, 16], strides = [1, 1, 1]} : vector<4x16x16xf32> to vector<1x16x16xf32>
    %138 = vector.shape_cast %137 : vector<1x16x16xf32> to vector<16x16xf32>
    %c3_55 = arith.constant 3 : index
    %c3_56 = arith.constant 3 : index
    %139 = memref.load %arg5[%c3_55, %c3_56] : memref<4x4xf32, #tpu.memory_space<smem>>
    %140 = vector.broadcast %139 : f32 to vector<16x16xf32>
    %141 = arith.mulf %138, %140 : vector<16x16xf32>
    %142 = arith.addf %136, %141 : vector<16x16xf32>
    %c3_57 = arith.constant 3 : index
    %143 = memref.load %arg6[%c3_57] : memref<4xf32, #tpu.memory_space<smem>>
    %144 = vector.broadcast %143 : f32 to vector<16x16xf32>
    %145 = arith.addf %142, %144 : vector<16x16xf32>
    %c0_58 = arith.constant 0 : index
    %c3_59 = arith.constant 3 : index
    %c0_60 = arith.constant 0 : index
    %c0_61 = arith.constant 0 : index
    %146 = vector.load %arg7[%c0_58, %c3_59, %c0_60, %c0_61] : memref<1x4x16x16xf32, #tpu.memory_space<vmem>>, vector<1x1x16x16xf32>
    %147 = vector.shape_cast %146 : vector<1x1x16x16xf32> to vector<16x16xf32>
    %148 = vector.shape_cast %145 : vector<16x16xf32> to vector<1x1x16x16xf32>
    tpu.vector_store %arg7[%c0_58, %c3_59, %c0_60, %c0_61], %148 {strides = array<i32>} : memref<1x4x16x16xf32, #tpu.memory_space<vmem>>, vector<1x1x16x16xf32>,
    return
  }
  func.func @transform_0(%arg0: i32, %arg1: i32) -> (i32, i32, i32, i32) {
    %c0_i32 = arith.constant 0 : i32
    %c0_i32_0 = arith.constant 0 : i32
    %c0_i32_1 = arith.constant 0 : i32
    return %arg0, %c0_i32, %arg1, %c0_i32_0 : i32, i32, i32, i32
  }
  func.func @transform_1(%arg0: i32, %arg1: i32) -> (i32, i32, i32, i32) {
    %c2_i32 = arith.constant 2 : i32
    %0 = arith.muli %arg1, %c2_i32 : i32
    %c1_i32 = arith.constant 1 : i32
    %1 = arith.subi %0, %c1_i32 : i32
    %c0_i32 = arith.constant 0 : i32
    %2 = arith.maxsi %1, %c0_i32 : i32
    %c0_i32_0 = arith.constant 0 : i32
    %c0_i32_1 = arith.constant 0 : i32
    %c0_i32_2 = arith.constant 0 : i32
    return %arg0, %c0_i32_0, %2, %c0_i32_1 : i32, i32, i32, i32
  }
  func.func @transform_2(%arg0: i32, %arg1: i32) -> (i32, i32, i32, i32) {
    %c1_i32 = arith.constant 1 : i32
    %0 = arith.addi %arg1, %c1_i32 : i32
    %c2_i32 = arith.constant 2 : i32
    %1 = arith.muli %0, %c2_i32 : i32
    %c1_i32_0 = arith.constant 1 : i32
    %2 = arith.minsi %1, %c1_i32_0 : i32
    %c0_i32 = arith.constant 0 : i32
    %c0_i32_1 = arith.constant 0 : i32
    %c0_i32_2 = arith.constant 0 : i32
    return %arg0, %c0_i32, %2, %c0_i32_1 : i32, i32, i32, i32
  }
  func.func @transform_3(%arg0: i32, %arg1: i32) -> (i32, i32) {
    %c0_i32 = arith.constant 0 : i32
    %c0_i32_0 = arith.constant 0 : i32
    %c0_i32_1 = arith.constant 0 : i32
    return %c0_i32, %c0_i32_0 : i32, i32
  }
  func.func @transform_4(%arg0: i32, %arg1: i32) -> i32 {
    %c0_i32 = arith.constant 0 : i32
    %c0_i32_0 = arith.constant 0 : i32
    return %c0_i32 : i32
  }
  func.func @transform_5(%arg0: i32, %arg1: i32) -> (i32, i32, i32, i32) {
    %c0_i32 = arith.constant 0 : i32
    %c0_i32_0 = arith.constant 0 : i32
    %c0_i32_1 = arith.constant 0 : i32
    return %arg0, %c0_i32, %arg1, %c0_i32_0 : i32, i32, i32, i32
  }
}

</mosaic_0001>

<bundles_post_ra>
// kernel: edge_enhancement_forward.1
= control target key start
LH: loop header
LB: loop body
LE: loop exit
PB: predicated region body
PF: predicated region fallthrough
CT: control target
= control target key end

     0   :  { %s1851_s0 = inlined_call_operand.hbm [shape: f32[2,4,16,16], index: 0, kind: input, shape index: {}, may-alias: {0,1,2}]   ;;  %s1852_s1 = inlined_call_operand.hbm [shape: f32[2,4,16,16], index: 1, kind: input, shape index: {}, may-alias: {0,1,2}]   ;;  %s1853_s2 = inlined_call_operand.hbm [shape: f32[2,4,16,16], index: 2, kind: input, shape index: {}, may-alias: {0,1,2}]   ;;  %s1854_s3 = inlined_call_operand.vmem [shape: f32[4,4], index: 3, kind: input, shape index: {}]   ;;  %s1855_s4 = inlined_call_operand.vmem [shape: f32[4], index: 4, kind: input, shape index: {}]   ;;  %s1856_s5 = inlined_call_operand.hbm [shape: f32[2,4,16,16], index: 5, kind: output, shape index: {}]  }
   0x1   :  { %1874 = sst [smem:[#allocation22_spill]] %s1852_s1 }
   0x2   :  { %1875 = sst [smem:[#allocation23_spill]] %s1854_s3 }
   0x3   :  { %10 = vsyncpa [#allocation3], 0 }
   0x4   :  { %12 = vsyncpa [#allocation3 + $0x1], 0 }
   0x5   :  { %13 = vsyncpa [#allocation7], 0 }
   0x6   :  { %15 = vsyncpa [#allocation7 + $0x1], 0 }
   0x7   :  { %16 = vsyncpa [#allocation5], 0 }
   0x8   :  { %17 = vsyncpa [#allocation11], 0 }
   0x9   :  { %18 = vsyncpa [#allocation4], 0 }
   0xa   :  { %20 = vsyncpa [#allocation4 + $0x1], 0  ;;  %s1317_s18 = smov 0   ;;  %s1319_s19 = smov 0  }
   0xb   :  { %s1321_s20 = smov 0   ;;  %s1323_s21 = smov 0  }
   0xc   :  { %s1325_s22 = smov 0   ;;  %s1327_s23 = smov 0  }
   0xd LB: > { %1876 = sst [smem:[#allocation18_spill]] %s1260_s20  ;;  %s38_s24 = sadd.s32 1, %s1268_s22  ;;  %s1272_s23 = sphi %s1327_s23, %s26_s23   ;;  %s1268_s22 = sphi %s1325_s22, %s1907_s22   ;;  %s1264_s21 = sphi %s1323_s21, %s1906_s21   ;;  %s1260_s20 = sphi %s1321_s20, %s1905_s20   ;;  %s1256_s19 = sphi %s1319_s19, %s1909_s19   ;;  %s1252_s18 = sphi %s1317_s18, %s1908_s18  }
   0xe   : > { %1877 = sst [smem:[#allocation19_spill]] %s1268_s22  ;;  %s47_s25 = sadd.s32 1, %s1260_s20 }
   0xf   : > { %p40_p0 = scmp.ge.s32.totalorder %s38_s24, 2  ;;  %p1857_p1 = scmp.ne.s32.totalorder %s1260_s20, %s1256_s19 }
  0x10   : > { %p55_p2 = scmp.eq.s32.totalorder %s1272_s23, 0  ;;  %p997_p5 = scmp.lt.s32.totalorder %s1272_s23, 2 }
  0x11   : > { %s1911_s24 = smov (%p40_p0, %s38_s24), 0  ;;  %s1362_s27 = sand.u32 1, %s1260_s20  }
  0x12   : > { %1878 = sst [smem:[#allocation20_spill]] %s1911_s24  ;;  %p56_p4 = por %p55_p2, %p1857_p1 }
  0x13   : > { %s42_s26 = ssub.s32 %s1268_s22, %s1911_s24  ;;  %s1365_s28 = sshll.u32 %s1268_s22, 10 }
  0x14   : > { %p45_p6 = scmp.eq.s32.totalorder %s42_s26, 0  ;;  %p1367_p7 = pnand %p997_p5, %p56_p4 }
  0x15   : > { %s271_s6 = sand.u32 1, %s1272_s23   ;;  %s910_s7 = sshll.u32 %s1362_s27, 5 }
  0x16   : > { %s1879_s29 = scalar_select %p1367_p7, 1, 0 }
  0x17   : > { %s1372_s30 = scalar_select %p45_p6, %s1260_s20, %s47_s25  }
  0x18   : > { %s1881_s1 = sld [smem:[#allocation22_spill]]  ;;  %s275_s11 = scalar_lea.vmem [#allocation6], %s910_s7 }
  0x19   : > { %1880 = sst [smem:[#allocation21_spill]] %s1372_s30  ;;  %s287_s12 = sshll.u32 %s275_s11, 4  ;;  %s1384_s12 = int_to_ptr.vmem [resolvable:$true] %s287_s12 }
  0x1a   : > { %s1386_s13 = scalar_lea.sflag [#allocation7], %s271_s6  ;;  %p1392_p9 = pneg %p1367_p7 }
  0x1c   : > { %s1882_s15 = scalar_select %p1392_p9, 1, 0 }
  0x1e   : > { %s1380_s10 = scalar_lea.hbm %s1881_s1, %s1365_s28  ;;  %s1063_s25 = scalar_lea.hbm %s1881_s1, 2048 }
  0x1f   : > { %s1058_s14 = scalar_lea.hbm %s1380_s10, 512  ;;  %p1064_p12 = scmp.lt.u32.totalorder %s1380_s10, %s1881_s1 }
  0x20   : > { %p1059_p8 = scmp.ne.s32.totalorder %s1380_s10, %s1058_s14  ;;  %p1065_p13 = scmp.lt.u32.totalorder %s1063_s25, %s1058_s14 }
  0x21   : > { %p1067_p2 = scmp.lt.u32.totalorder %s1058_s14, %s1380_s10 }
  0x22   : > { %p1061_p10 = pnand %p1392_p9, %p1059_p8  ;;  %p1066_p0 = por %p1065_p13, %p1064_p12 }
  0x24   : > { %p1062_p11 = pneg %p1061_p10  ;;  %p1068_p4 = por %p1067_p2, %p1066_p0 }
  0x26   : > { %p1069_p5 = pnand %p1068_p4, %p1062_p11 }
  0x28   : > { %1072 = shalt.err (!%p1069_p5)
}
  0x29   : > { %s1073_s6 = scalar_lea.vmem %s1384_s12, 512  ;;  %s1274_s9 = smov [#allocation6]  }
  0x2a   : > { %p1074_p6 = scmp.ne.s32.totalorder %s1384_s12, %s1073_s6  ;;  %s1078_s11 = sshll.u32 %s1274_s9, 4  ;;  %s1079_s11 = int_to_ptr.vmem [resolvable:$false] %s1078_s11 }
  0x2b   : > { %s1080_s16 = scalar_lea.vmem %s1079_s11, 1024  ;;  %p1081_p3 = scmp.lt.s32.totalorder %s1384_s12, %s1079_s11 }
  0x2c   : > { %p1076_p8 = pnand %p1074_p6, %p1392_p9  ;;  %p1082_p1 = scmp.lt.s32.totalorder %s1080_s16, %s1073_s6 }
  0x2e   : > { %p1077_p10 = pneg %p1076_p8  ;;  %p1083_p12 = por %p1082_p1, %p1081_p3 }
  0x30   : > { %p1084_p13 = pnand %p1083_p12, %p1077_p10 }
  0x32   : > { %1087 = shalt.err (!%p1084_p13)
}
  0x33   : > { %s1858_s14 = smov 256   ;;  %s1859_s17 = smov 128  }
  0x34   : > { %s1861_s25 = smov 8   ;;  %s301_s26 = scalar_lea.vmem [#allocation8], %s910_s7 }
  0x35   : > { %987 = dma.hbm_to_vmem [thread:$0]  (!%p1367_p7), %s1380_s10, 512, %s1384_s12, %s1386_s13, %s1858_s14, %s1859_s17, %s1861_s25  }
  0x36   : > { %s313_s8 = sshll.u32 %s301_s26, 4  ;;  %s1424_s6 = sadd.s32 4294967295, %s1272_s23   ;;  %s1421_s8 = int_to_ptr.vmem [resolvable:$true] %s313_s8 }
  0x37   : > { %s902_s9 = sadd.s32 4294967294, %s1272_s23   ;;  %p60_p1 = scmp.ne.s32.totalorder %s1256_s19, %s1252_s18 }
  0x38   : > { %p1866_p3 = scmp.eq.s32.totalorder %s1424_s6, 0  ;;  %p200_p11 = scmp.eq.s32.totalorder %s1424_s6, 1 }
  0x39   : > { %p206_p0 = scmp.eq.s32.totalorder %s902_s9, 1  ;;  %p903_p2 = scmp.ge.s32.totalorder %s1272_s23, 1 }
  0x3a   : > { %p1434_p4 = por %p1866_p3, %p60_p1  ;;  %p1884_p5 = scmp.ne.s32.totalorder %s1260_s20, %s1256_s19 }
  0x3b   : > { %p1445_p8 = por %p206_p0, %p60_p1  ;;  %p213_p10 = scmp.lt.s32.totalorder %s1272_s23, 3 }
  0x3c   : > { %s1883_s7 = scalar_select %p1434_p4, 1, 0 }
  0x3d   : > { %p1441_p6 = por %p200_p11, %p1884_p5  ;;  %s1887_s3 = sld [smem:[#allocation23_spill]] }
  0x3e   : > { %s1886_s12 = scalar_select %p1445_p8, 1, 0 }
  0x3f   : > { %s1885_s10 = scalar_select %p1441_p6, 1, 0 }
  0x40   : > { %p1453_p12 = pnand %p903_p2, %p213_p10  ;;  %s237_s25 = sshll.u32 %s1855_s4, 4  ;;  %s238_s25 = int_to_ptr.vmem [resolvable:$true] %s237_s25 }
  0x41   : > { %s907_s11 = sshll.u32 %s1362_s27, 6  ;;  %s1473_s24 = scalar_lea.hbm %s1851_s0, %s1365_s28 }
  0x42   : > { %s1888_s9 = scalar_select %p1453_p12, 1, 0 }
  0x43   : > { %s226_s26 = sshll.u32 %s1887_s3, 4  ;;  %p974_p13 = pneg %p1453_p12  ;;  %s227_s26 = int_to_ptr.vmem [resolvable:$true] %s226_s26 }
  0x44   : > { %s252_s22 = scalar_lea.vmem [#allocation2], %s907_s11  ;;  %s1088_s20 = scalar_lea.vmem %s227_s26, 64 }
  0x45   : > { %p1464_p1 = pnand %p974_p13, %p1866_p3  ;;  %s261_s30 = sshll.u32 %s252_s22, 4  ;;  %s1481_s30 = int_to_ptr.vmem [resolvable:$true] %s261_s30 }
  0x46   : > { %p1089_p11 = scmp.ne.s32.totalorder %s227_s26, %s1088_s20  ;;  %p1096_p10 = scmp.lt.s32.totalorder %s227_s26, %s227_s26 }
  0x47   : > { %p1090_p0 = pneg %p1464_p1  ;;  %p1097_p13 = scmp.lt.s32.totalorder %s1088_s20, %s1088_s20 }
  0x49   : > { %p1091_p2 = pnand %p1090_p0, %p1089_p11  ;;  %p1098_p3 = por %p1097_p13, %p1096_p10 }
  0x4b   : > { %p1092_p5 = pneg %p1091_p2 }
  0x4d   : > { %p1099_p8 = pnand %p1098_p3, %p1092_p5 }
  0x4f   : > { %1102 = shalt.err (!%p1099_p8)
}
  0x50   : > { %s1278_s14 = smov [#allocation9]   ;;  %s1103_s3 = scalar_lea.vmem %s238_s25, 16 }
  0x51   : > { %977 = dma.vmem_to_smem (!%p1464_p1), %s227_s26, 64, %s1278_s14, [#allocation5]  }
  0x52   : > { %p1104_p6 = scmp.ne.s32.totalorder %s238_s25, %s1103_s3  ;;  %p1111_p7 = scmp.lt.s32.totalorder %s238_s25, %s238_s25 }
  0x53   : > { %p1112_p9 = scmp.lt.s32.totalorder %s1103_s3, %s1103_s3 }
  0x54   : > { %p1106_p4 = pnand %p1104_p6, %p1090_p0 }
  0x55   : > { %p1113_p11 = por %p1112_p9, %p1111_p7 }
  0x56   : > { %p1107_p12 = pneg %p1106_p4 }
  0x58   : > { %p1114_p2 = pnand %p1113_p11, %p1107_p12 }
  0x5a   : > { %1117 = shalt.err (!%p1114_p2)
}
  0x5b   : > { %s1279_s22 = smov [#allocation10]   ;;  %s955_s20 = sadd.s32 128, %s1365_s28 }
  0x5c   : > { %980 = dma.vmem_to_smem (!%p1464_p1), %s238_s25, 16, %s1279_s22, [#allocation11]  }
  0x5d   : > { %s249_s17 = scalar_lea.sflag [#allocation3], %s1362_s27  ;;  %s1118_s26 = scalar_lea.hbm %s1473_s24, 1024 }
  0x5e   : > { %p1119_p3 = scmp.ne.s32.totalorder %s1473_s24, %s1118_s26  ;;  %p1890_p7 = scmp.ne.s32.totalorder %s1882_s15, 0 }
  0x5f   : > { %s1123_s1 = scalar_lea.hbm %s1851_s0, 2048  ;;  %p1124_p6 = scmp.lt.u32.totalorder %s1473_s24, %s1851_s0 }
  0x60   : > { %p1121_p9 = pnand %p1119_p3, %p1890_p7  ;;  %p1125_p8 = scmp.lt.u32.totalorder %s1123_s1, %s1118_s26 }
  0x61   : > { %p1127_p1 = scmp.lt.u32.totalorder %s1118_s26, %s1473_s24 }
  0x62   : > { %p1122_p4 = pneg %p1121_p9  ;;  %p1126_p12 = por %p1125_p8, %p1124_p6 }
  0x64   : > { %p1128_p0 = por %p1127_p1, %p1126_p12 }
  0x66   : > { %p1129_p5 = pnand %p1128_p0, %p1122_p4 }
  0x68   : > { %1132 = shalt.err (!%p1129_p5)
}
  0x69   : > { %s1133_s25 = scalar_lea.vmem %s1481_s30, 1024  ;;  %s1280_s22 = smov [#allocation2]  }
  0x6a   : > { %p1134_p10 = scmp.ne.s32.totalorder %s1481_s30, %s1133_s25  ;;  %s1138_s11 = sshll.u32 %s1280_s22, 4  ;;  %s1139_s11 = int_to_ptr.vmem [resolvable:$false] %s1138_s11 }
  0x6b   : > { %s1140_s16 = scalar_lea.vmem %s1139_s11, 2048  ;;  %p1141_p2 = scmp.lt.s32.totalorder %s1481_s30, %s1139_s11 }
  0x6c   : > { %p1136_p13 = pnand %p1134_p10, %p1890_p7  ;;  %p1142_p3 = scmp.lt.s32.totalorder %s1140_s16, %s1133_s25 }
  0x6e   : > { %p1137_p11 = pneg %p1136_p13  ;;  %p1143_p9 = por %p1142_p3, %p1141_p2 }
  0x70   : > { %p1144_p6 = pnand %p1143_p9, %p1137_p11 }
  0x72   : > { %1147 = shalt.err (!%p1144_p6)
}
  0x73   : > { %p1891_p4 = scmp.ne.s32.totalorder %s1879_s29, 0  ;;  %s1892_s26 = smov 8  }
  0x74   : > { %s1893_s1 = smov 128   ;;  %s1516_s25 = scalar_lea.hbm %s1853_s2, %s955_s20 }
  0x75   : > { %984 = dma.hbm_to_vmem [thread:$0]  (!%p1891_p4), %s1473_s24, 1024, %s1481_s30, %s249_s17, %s1893_s1, %s1893_s1, %s1892_s26  }
  0x76   : > { %s1148_s22 = scalar_lea.hbm %s1516_s25, 512  ;;  %s1153_s16 = scalar_lea.hbm %s1853_s2, 2048 }
  0x77   : > { %p1149_p8 = scmp.ne.s32.totalorder %s1516_s25, %s1148_s22  ;;  %p1154_p0 = scmp.lt.u32.totalorder %s1516_s25, %s1853_s2 }
  0x78   : > { %p1155_p5 = scmp.lt.u32.totalorder %s1153_s16, %s1148_s22  ;;  %p1157_p13 = scmp.lt.u32.totalorder %s1148_s22, %s1516_s25 }
  0x79   : > { %p1151_p12 = pnand %p1149_p8, %p1890_p7 }
  0x7a   : > { %p1156_p10 = por %p1155_p5, %p1154_p0 }
  0x7b   : > { %p1152_p1 = pneg %p1151_p12 }
  0x7c   : > { %p1158_p11 = por %p1157_p13, %p1156_p10 }
  0x7e   : > { %p1159_p2 = pnand %p1158_p11, %p1152_p1 }
  0x80   : > { %1162 = shalt.err (!%p1159_p2)
}
  0x81   : > { %s1163_s30 = scalar_lea.vmem %s1421_s8, 512  ;;  %s1281_s20 = smov [#allocation8]  }
  0x82   : > { %p1164_p3 = scmp.ne.s32.totalorder %s1421_s8, %s1163_s30  ;;  %s1168_s17 = sshll.u32 %s1281_s20, 4  ;;  %s1169_s17 = int_to_ptr.vmem [resolvable:$false] %s1168_s17 }
  0x83   : > { %s1170_s14 = scalar_lea.vmem %s1169_s17, 1024  ;;  %p1171_p8 = scmp.lt.s32.totalorder %s1421_s8, %s1169_s17 }
  0x84   : > { %p1166_p9 = pnand %p1164_p3, %p1890_p7  ;;  %p1172_p12 = scmp.lt.s32.totalorder %s1170_s14, %s1163_s30 }
  0x86   : > { %p1167_p6 = pneg %p1166_p9  ;;  %p1173_p0 = por %p1172_p12, %p1171_p8 }
  0x88   : > { %p1174_p5 = pnand %p1173_p0, %p1167_p6 }
  0x8a   : > { %1177 = shalt.err (!%p1174_p5)
}
  0x8b   : > { %s1894_s3 = smov 256   ;;  %p1895_p7 = scmp.ne.s32.totalorder %s1888_s9, 0 }
  0x8c   : > { %990 = dma.hbm_to_vmem [thread:$0]  (!%p1891_p4), %s1516_s25, 512, %s1421_s8, %s1386_s13, %s1894_s3, %s1893_s1, %s1892_s26  }
  0x8d   : > { %325 = sbr.rel (%p1895_p7) target bundleno = 336 (0x150), region = 40  ;;  %s1546_s15 = sand.u32 (!%p1895_p7), 1, %s1256_s19  }
  0x8e   : > { %s917_s22 = sshll.u32 (!%p1895_p7), %s1546_s15, 6  ;;  %s328_s27 = scalar_lea.sflag (!%p1895_p7), [#allocation3], %s1546_s15 }
  0x8f   : > { %s1552_s29 = scalar_lea.vmem (!%p1895_p7), [#allocation2], %s917_s22  ;;  %p1896_p1 = scmp.ne.s32.totalorder (!%p1895_p7), %s1883_s7, 0 }
  0x94   : > { %1231 = dma.done.wait (%p1896_p1), %s328_s27, 1024  }
  0x95   : > { %1233 = vsyncadd (%p1896_p1), %s328_s27, 4294966272  ;;  %s336_s13 = sand.u32 1, %s1424_s6   ;;  %s918_s8 = sshll.u32 %s1546_s15, 5 }
  0x96   : > { %s337_s9 = scalar_lea.sflag [#allocation7], %s336_s13  ;;  %s1560_s26 = scalar_lea.vmem [#allocation6], %s918_s8 }
  0x97   : > { %1235 = dma.done.wait (%p1896_p1), %s337_s9, 1024  }
  0x98   : > { %1237 = vsyncadd (%p1896_p1), %s337_s9, 4294966272  ;;  %s1566_s1 = scalar_lea.vmem [#allocation8], %s918_s8  ;;  %p1897_p4 = scmp.eq.s32.totalorder %s1424_s6, 0 }
  0x9a   : > { %1239 = dma.done.wait (%p1897_p4), [#allocation5], 64   ;;  %p1898_p10 = pmov %p1897_p4 }
  0x9b   : > { %p1899_p13 = pmov %p1897_p4 }
  0x9c   : > { %1241 = vsyncadd (%p1898_p10), [#allocation5], 4294967232 }
  0x9d   : > { %1243 = dma.done.wait (%p1899_p13), [#allocation11], 16   ;;  %p1900_p11 = pmov %p1897_p4 }
  0x9f   : > { %1245 = vsyncadd (%p1900_p11), [#allocation11], 4294967280 }
  0xa0   : > { %362 = sfence }
  0xa1   : > { %v407_v0 = vld [vmem:[%s1552_s29 + $0x10] sm:$0xff]  ;;  %v405_v1 = vld [vmem:[%s1552_s29] sm:$0xff]  ;;  %s1282_s7 = smov 1   ;;  %v408_v4 = vld [vmem:[%s1552_s29 + $0x18] sm:$0xff]  ;;  %vm445_vm0 = vcmask 1040384   ;;  %vm470_vm1 = vcmask 1046528  }
  0xa2   : > { %511 = vrot.lane.b32.xlu1 %v407_v0, %s1282_s7  ;;  %v449_v2 = vrot.slane %v407_v0, 7  ;;  %507 = vrot.lane.b32.xlu0 %v405_v1, %s1282_s7  ;;  %v446_v3 = vrot.slane %v405_v1, 7  ;;  %v406_v5 = vld [vmem:[%s1552_s29 + $0x8] sm:$0xff]  ;;  %v471_v6 = vrot.slane %v405_v1, 1  ;;  %v450_v7 = vrot.slane %v408_v4, 7  ;;  %v428_v11 = vld [vmem:[%s1566_s1] sm:$0xff] }
  0xa3   : > { %v447_v8 = vrot.slane %v406_v5, 7  ;;  %v472_v9 = vrot.slane %v406_v5, 1  ;;  %v1583_v10 = vld [vmem:[%s1552_s29 + $0x28] sm:$0xff]  ;;  %v474_v12 = vrot.slane %v407_v0, 1  ;;  %v475_v13 = vrot.slane %v408_v4, 1  ;;  %v1588_v15 = vld [vmem:[%s1552_s29 + $0x20] sm:$0xff] }
  0xa4   : > { %v453_v14 = vrot.slane %v1583_v10, 7  ;;  %v452_v16 = vrot.slane %v1588_v15, 7  ;;  %v433_v17 = vmul.f32 0.0, %v428_v11  ;;  %v419_v19 = vld [vmem:[%s1560_s26] sm:$0xff]  ;;  %v451_v21 = vsel %vm445_vm0, %v449_v2, %v450_v7  ;;  %v429_v25 = vld [vmem:[%s1566_s1 + $0x8] sm:$0xff]  ;;  %s1283_s6 = smov 127  }
  0xa5   : > { %v448_v18 = vsel %vm445_vm0, %v446_v3, %v447_v8  ;;  %v473_v20 = vsel %vm470_vm1, %v471_v6, %v472_v9  ;;  %v1597_v23 = vmul.f32 5.0, %v406_v5  ;;  %v424_v24 = vmul.f32 0.0, %v419_v19  ;;  %v420_v26 = vld [vmem:[%s1560_s26 + $0x8] sm:$0xff]  ;;  %v430_v34 = vld [vmem:[%s1566_s1 + $0x10] sm:$0xff]  ;;  %v412_v41 = vld [vmem:[%s1552_s29 + $0x38] sm:$0xff]  ;;  %s1686_s25 = sld [smem:[#allocation9]] }
  0xa6   : > { %513 = vrot.lane.b32.xlu1 %v408_v4, %s1282_s7  ;;  %509 = vrot.lane.b32.xlu0 %v406_v5, %s1282_s7  ;;  %v495_v22 = vrot.slane %v433_v17, 1  ;;  %v1601_v27 = vmul.f32 5.0, %v405_v1  ;;  %v434_v28 = vmul.f32 0.0, %v429_v25  ;;  %v425_v29 = vmul.f32 0.0, %v420_v26  ;;  %v421_v40 = vld [vmem:[%s1560_s26 + $0x10] sm:$0xff]  ;;  %v431_v62 = vld [vmem:[%s1566_s1 + $0x18] sm:$0xff] }
  0xa7   : > { %v476_v30 = vsel %vm470_vm1, %v474_v12, %v475_v13  ;;  %v478_v31 = vrot.slane %v1583_v10, 1  ;;  %v466_v33 = vsel %vm445_vm0, %v424_v24, %v446_v3  ;;  %v454_v35 = vsel %vm445_vm0, %v452_v16, %v453_v14  ;;  %v411_v49 = vld [vmem:[%s1552_s29 + $0x30] sm:$0xff]  ;;  %v422_v3 = vld [vmem:[%s1560_s26 + $0x18] sm:$0xff]  ;;  %s1688_s11 = sld [smem:[#allocation9 + $0x80]]  ;;  %s1694_s28 = sld [smem:[#allocation9 + $0x1]] }
  0xa8   : > { %v503_v32 = vsel %vm470_vm1, %v472_v9, %v495_v22  ;;  %v477_v36 = vrot.slane %v1588_v15, 1  ;;  %v1614_v38 = vadd.f32 %v473_v20, %v466_v33  ;;  %v496_v39 = vrot.slane %v434_v28, 1  ;;  %s1690_s16 = sld [smem:[#allocation9 + $0x100]]  ;;  %s1696_s30 = sld [smem:[#allocation9 + $0x81]] }
  0xa9   : > { %v1612_v37 = vadd.f32 %v503_v32, %v448_v18  ;;  %v467_v42 = vsel %vm445_vm0, %v425_v29, %v449_v2  ;;  %v1619_v43 = vmul.f32 5.0, %v407_v0  ;;  %v435_v44 = vmul.f32 0.0, %v430_v34  ;;  %s1692_s24 = sld [smem:[#allocation9 + $0x180]]  ;;  %s1698_s20 = sld [smem:[#allocation9 + $0x101]] }
  0xaa   : > { %542 = vrot.lane.b32.xlu1 %v406_v5, %s1283_s6  ;;  %540 = vrot.lane.b32.xlu0 %v405_v1, %s1283_s6  ;;  %v456_v45 = vrot.slane %v412_v41, 7  ;;  %v589_v47 = vsub.f32 %v1601_v27, %v1614_v38  ;;  %v1625_v48 = vmul.f32 5.0, %v408_v4  ;;  %v504_v50 = vsel %vm470_vm1, %v475_v13, %v496_v39  ;;  %s1703_s17 = sld [smem:[#allocation9 + $0x181]]  ;;  %s1724_s14 = sld [smem:[#allocation9 + $0x2]] }
  0xab   : > { %v590_v46 = vsub.f32 %v1597_v23, %v1612_v37  ;;  %v1631_v51 = vadd.f32 %v476_v30, %v467_v42  ;;  %v497_v52 = vrot.slane %v435_v44, 1  ;;  %v426_v53 = vmul.f32 0.0, %v421_v40  ;;  %s1726_s3 = sld [smem:[#allocation9 + $0x82]]  ;;  %s1746_s13 = sld [smem:[#allocation9 + $0x3]] }
  0xac   : > { %v455_v54 = vrot.slane %v411_v49, 7  ;;  %v1633_v55 = vadd.f32 %v504_v50, %v451_v21  ;;  %v1636_v56 = vmul.f32 5.0, %v1583_v10  ;;  %v479_v57 = vsel %vm470_vm1, %v477_v36, %v478_v31  ;;  %s1734_s27 = sld [smem:[#allocation9 + $0x102]]  ;;  %s1748_s8 = sld [smem:[#allocation9 + $0x83]] }
  0xad   : > { %v481_v58 = vrot.slane %v412_v41, 1  ;;  %v480_v59 = vrot.slane %v411_v49, 1  ;;  %v591_v60 = vsub.f32 %v1619_v43, %v1631_v51  ;;  %v505_v61 = vsel %vm470_vm1, %v478_v31, %v497_v52  ;;  %s1736_s29 = sld [smem:[#allocation9 + $0x182]]  ;;  %s1756_s9 = sld [smem:[#allocation9 + $0x103]] }
  0xae   : > { %546 = vrot.lane.b32.xlu1 %v408_v4, %s1283_s6  ;;  %544 = vrot.lane.b32.xlu0 %v407_v0, %s1283_s6  ;;  %v592_v63 = vsub.f32 %v1625_v48, %v1633_v55  ;;  %v1645_v0 = vadd.f32 %v505_v61, %v454_v35  ;;  %v468_v1 = vsel %vm445_vm0, %v426_v53, %v452_v16  ;;  %v1653_v2 = vmul.f32 5.0, %v1588_v15  ;;  %s1758_s26 = sld [smem:[#allocation9 + $0x183]]  ;;  %s1760_s1 = sld [smem:[#allocation10]] }
  0xaf   : > { %v1658_v5 = vadd.f32 %v479_v57, %v468_v1  ;;  %v436_v6 = vmul.f32 0.0, %v431_v62  ;;  %v457_v7 = vsel %vm445_vm0, %v455_v54, %v456_v45  ;;  %v482_v8 = vsel %vm470_vm1, %v480_v59, %v481_v58  ;;  %p1901_p3 = scmp.ne.s32.totalorder %s1885_s10, 0 }
  0xb0   : > { %v594_v4 = vsub.f32 %v1636_v56, %v1645_v0  ;;  %v427_v12 = vmul.f32 0.0, %v422_v3  ;;  %v1668_v13 = vmul.f32 5.0, %v412_v41  ;;  %v1670_v14 = vmul.f32 5.0, %v411_v49 }
  0xb1   : > { %v593_v9 = vsub.f32 %v1653_v2, %v1658_v5  ;;  %v498_v11 = vrot.slane %v436_v6, 1  ;;  %vm564_vm2 = vcmask 121856   ;;  %vm531_vm3 = vcmask 7168  }
  0xb2   : > { %517 = vrot.lane.b32.xlu1 %v1583_v10, %s1282_s7  ;;  %515 = vrot.lane.b32.xlu0 %v1588_v15, %s1282_s7  ;;  %v469_v17 = vsel %vm445_vm0, %v427_v12, %v455_v54  ;;  %v643_v42 = vstv %s1688_s11  ;;  %v672_v44 = vstv %s1690_s16  ;;  %vm639_vm4 = vcmask 130048   ;;  %s956_s11 = sshll.u32 %s1264_s21, 10  ;;  %s394_s16 = scalar_lea.vmem [#allocation12], %s917_s22 }
  0xb3   : > { %v506_v16 = vsel %vm470_vm1, %v481_v58, %v498_v11  ;;  %v1676_v19 = vadd.f32 %v482_v8, %v469_v17  ;;  %v701_v50 = vstv %s1692_s24  ;;  %v618_v23 = vstv %s1694_s28  ;;  %s745_s24 = sshll.u32 %s394_s16, 4  ;;  %s1792_s21 = scalar_lea.hbm %s1856_s5, %s956_s11  ;;  %s1794_s24 = int_to_ptr.vmem [resolvable:$true] %s745_s24 }
  0xb4   : > { %v1674_v18 = vadd.f32 %v506_v16, %v457_v7  ;;  %v647_v37 = vstv %s1696_s30  ;;  %v676_v61 = vstv %s1698_s20  ;;  %v705_v62 = vstv %s1703_s17  ;;  %s730_s22 = scalar_lea.sflag [#allocation4], %s1546_s15  ;;  %s1178_s20 = scalar_lea.vmem %s1794_s24, 1024 }
  0xb5   : > { %p1179_p2 = scmp.ne.s32.totalorder %s1794_s24, %s1178_s20  ;;  %s1284_s17 = smov [#allocation12]  }
  0xb6   : > { %550 = vrot.lane.b32.xlu1 %v1583_v10, %s1283_s6  ;;  %548 = vrot.lane.b32.xlu0 %v1588_v15, %s1283_s6  ;;  %v596_v10 = vsub.f32 %v1668_v13, %v1674_v18  ;;  %v595_v15 = vsub.f32 %v1670_v14, %v1676_v19 }
  0xb7   : > { %p1180_p9 = pnand %p1179_p2, %p1901_p3 }
  0xb9   : > { %p1181_p6 = pneg %p1180_p9 }
  0xba   : > { %521 = vrot.lane.b32.xlu1 %v412_v41, %s1282_s7  ;;  %519 = vrot.lane.b32.xlu0 %v411_v49, %s1282_s7  ;;  %s1762_s7 = sld [smem:[#allocation10 + $0x1]] }
  0xbe   : > { %554 = vrot.lane.b32.xlu1 %v412_v41, %s1283_s6  ;;  %552 = vrot.lane.b32.xlu0 %v411_v49, %s1283_s6  ;;  %v614_v41 = vstv %s1686_s25  ;;  %s1764_s6 = sld [smem:[#allocation10 + $0x2]]  ;;  %s1766_s25 = sld [smem:[#allocation10 + $0x3]] }
 0x114   : > { %v512_v20 = vpop.permute.xlu1 %511  ;;  %v508_v21 = vpop.permute.xlu0 %507 }
 0x115   : > { %v532_v31 = vsel %vm531_vm3, 0.0, %v508_v21  ;;  %v534_v45 = vsel %vm531_vm3, 0.0, %v512_v20 }
 0x118   : > { %v514_v22 = vpop.permute.xlu1 %513  ;;  %v510_v24 = vpop.permute.xlu0 %509 }
 0x119   : > { %v533_v28 = vsel %vm531_vm3, 0.0, %v510_v24  ;;  %v535_v49 = vsel %vm531_vm3, 0.0, %v514_v22 }
 0x11c   : > { %v543_v25 = vpop.permute.xlu1 %542  ;;  %v541_v26 = vpop.permute.xlu0 %540 }
 0x11d   : > { %v566_v29 = vsel %vm564_vm2, %v543_v25, 0.0  ;;  %v565_v30 = vsel %vm564_vm2, %v541_v26, 0.0 }
 0x11e   : > { %v598_v32 = vadd.f32 %v566_v29, %v533_v28  ;;  %v597_v33 = vadd.f32 %v565_v30, %v532_v31 }
 0x120   : > { %v547_v34 = vpop.permute.xlu1 %546  ;;  %v545_v35 = vpop.permute.xlu0 %544  ;;  %v606_v36 = vsub.f32 %v590_v46, %v598_v32  ;;  %v605_v52 = vsub.f32 %v589_v47, %v597_v33 }
 0x121   : > { %v568_v39 = vsel %vm564_vm2, %v547_v34, 0.0  ;;  %v567_v40 = vsel %vm564_vm2, %v545_v35, 0.0 }
 0x122   : > { %v600_v46 = vadd.f32 %v568_v39, %v535_v49  ;;  %v599_v53 = vadd.f32 %v567_v40, %v534_v45  ;;  %v616_v58 = vmul.f32 %v614_v41, %v606_v36  ;;  %v645_v59 = vmul.f32 %v643_v42, %v606_v36 }
 0x123   : > { %v674_v1 = vmul.f32 %v672_v44, %v606_v36  ;;  %v703_v3 = vmul.f32 %v701_v50, %v606_v36  ;;  %v615_v47 = vmul.f32 %v614_v41, %v605_v52  ;;  %v644_v6 = vmul.f32 %v643_v42, %v605_v52 }
 0x124   : > { %v518_v54 = vpop.permute.xlu1 %517  ;;  %v516_v57 = vpop.permute.xlu0 %515  ;;  %v608_v27 = vsub.f32 %v592_v63, %v600_v46  ;;  %v607_v38 = vsub.f32 %v591_v60, %v599_v53  ;;  %v673_v7 = vmul.f32 %v672_v44, %v605_v52  ;;  %v702_v8 = vmul.f32 %v701_v50, %v605_v52 }
 0x125   : > { %v537_v30 = vsel %vm531_vm3, 0.0, %v518_v54  ;;  %v536_v31 = vsel %vm531_vm3, 0.0, %v516_v57  ;;  %v624_v40 = vstv %s1724_s14  ;;  %v653_v41 = vstv %s1726_s3  ;;  %s1182_s14 = sshll.u32 %s1284_s17, 4  ;;  %s1183_s14 = int_to_ptr.vmem [resolvable:$false] %s1182_s14 }
 0x126   : > { %v620_v11 = vmul.f32 %v618_v23, %v608_v27  ;;  %v649_v12 = vmul.f32 %v647_v37, %v608_v27  ;;  %v678_v16 = vmul.f32 %v676_v61, %v608_v27  ;;  %v707_v17 = vmul.f32 %v705_v62, %v608_v27  ;;  %s1184_s3 = scalar_lea.vmem %s1183_s14, 2048  ;;  %p1185_p8 = scmp.lt.s32.totalorder %s1794_s24, %s1183_s14 }
 0x127   : > { %v619_v48 = vmul.f32 %v618_v23, %v607_v38  ;;  %v648_v55 = vmul.f32 %v647_v37, %v607_v38  ;;  %v677_v63 = vmul.f32 %v676_v61, %v607_v38  ;;  %v706_v22 = vmul.f32 %v705_v62, %v607_v38  ;;  %p1186_p12 = scmp.lt.s32.totalorder %s1184_s3, %s1178_s20 }
 0x128   : > { %v551_v20 = vpop.permute.xlu1 %550  ;;  %v549_v21 = vpop.permute.xlu0 %548  ;;  %v622_v43 = vadd.f32 %v620_v11, %v616_v58  ;;  %v651_v51 = vadd.f32 %v649_v12, %v645_v59  ;;  %v680_v60 = vadd.f32 %v678_v16, %v674_v1  ;;  %v709_v24 = vadd.f32 %v707_v17, %v703_v3 }
 0x129   : > { %v621_v25 = vadd.f32 %v619_v48, %v615_v47  ;;  %v650_v26 = vadd.f32 %v648_v55, %v644_v6  ;;  %v679_v28 = vadd.f32 %v677_v63, %v673_v7  ;;  %v708_v29 = vadd.f32 %v706_v22, %v702_v8  ;;  %p1187_p0 = por %p1186_p12, %p1185_p8 }
 0x12a   : > { %v570_v32 = vsel %vm564_vm2, %v551_v20, 0.0  ;;  %v569_v33 = vsel %vm564_vm2, %v549_v21, 0.0  ;;  %v682_v42 = vstv %s1734_s27  ;;  %v711_v44 = vstv %s1736_s29 }
 0x12b   : > { %v602_v36 = vadd.f32 %v570_v32, %v537_v30  ;;  %v601_v39 = vadd.f32 %v569_v33, %v536_v31  ;;  %v630_v7 = vstv %s1746_s13  ;;  %v659_v8 = vstv %s1748_s8  ;;  %p1188_p5 = pnand %p1187_p0, %p1181_p6 }
 0x12c   : > { %v522_v34 = vpop.permute.xlu1 %521  ;;  %v520_v35 = vpop.permute.xlu0 %519  ;;  %v688_v11 = vstv %s1756_s9  ;;  %v717_v12 = vstv %s1758_s26  ;;  %v636_v20 = vstv %s1760_s1  ;;  %v665_v21 = vstv %s1762_s7 }
 0x12d   : > { %v610_v45 = vsub.f32 %v594_v4, %v602_v36  ;;  %v609_v49 = vsub.f32 %v593_v9, %v601_v39  ;;  %v539_v1 = vsel %vm531_vm3, 0.0, %v522_v34  ;;  %v538_v3 = vsel %vm531_vm3, 0.0, %v520_v35 }
 0x12e   : > { %v694_v48 = vstv %s1764_s6  ;;  %v723_v55 = vstv %s1766_s25 }
 0x12f   : > { %v626_v50 = vmul.f32 %v624_v40, %v610_v45  ;;  %v655_v52 = vmul.f32 %v653_v41, %v610_v45  ;;  %v684_v23 = vmul.f32 %v682_v42, %v610_v45  ;;  %v713_v37 = vmul.f32 %v711_v44, %v610_v45 }
 0x130   : > { %v625_v56 = vmul.f32 %v624_v40, %v609_v49  ;;  %v654_v0 = vmul.f32 %v653_v41, %v609_v49  ;;  %v683_v2 = vmul.f32 %v682_v42, %v609_v49  ;;  %v712_v4 = vmul.f32 %v711_v44, %v609_v49  ;;  %v555_v5 = vpop.permute.xlu1 %554  ;;  %v553_v9 = vpop.permute.xlu0 %552 }
 0x131   : > { %v628_v46 = vadd.f32 %v626_v50, %v622_v43  ;;  %v657_v53 = vadd.f32 %v655_v52, %v651_v51  ;;  %v686_v54 = vadd.f32 %v684_v23, %v680_v60  ;;  %v715_v57 = vadd.f32 %v713_v37, %v709_v24 }
 0x132   : > { %v627_v58 = vadd.f32 %v625_v56, %v621_v25  ;;  %v656_v59 = vadd.f32 %v654_v0, %v650_v26  ;;  %v685_v61 = vadd.f32 %v683_v2, %v679_v28  ;;  %v714_v62 = vadd.f32 %v712_v4, %v708_v29 }
 0x133   : > { %v572_v27 = vsel %vm564_vm2, %v555_v5, 0.0  ;;  %v571_v38 = vsel %vm564_vm2, %v553_v9, 0.0 }
 0x134   : > { %v604_v47 = vadd.f32 %v572_v27, %v539_v1  ;;  %v603_v6 = vadd.f32 %v571_v38, %v538_v3 }
 0x136   : > { %v612_v16 = vsub.f32 %v596_v10, %v604_v47  ;;  %v611_v17 = vsub.f32 %v595_v15, %v603_v6 }
 0x138   : > { %v632_v63 = vmul.f32 %v630_v7, %v612_v16  ;;  %v661_v22 = vmul.f32 %v659_v8, %v612_v16  ;;  %v690_v43 = vmul.f32 %v688_v11, %v612_v16  ;;  %v719_v51 = vmul.f32 %v717_v12, %v612_v16 }
 0x139   : > { %v631_v60 = vmul.f32 %v630_v7, %v611_v17  ;;  %v660_v24 = vmul.f32 %v659_v8, %v611_v17  ;;  %v689_v25 = vmul.f32 %v688_v11, %v611_v17  ;;  %v718_v26 = vmul.f32 %v717_v12, %v611_v17 }
 0x13a   : > { %v634_v13 = vadd.f32 %v632_v63, %v628_v46  ;;  %v663_v18 = vadd.f32 %v661_v22, %v657_v53  ;;  %v692_v14 = vadd.f32 %v690_v43, %v686_v54  ;;  %v721_v19 = vadd.f32 %v719_v51, %v715_v57 }
 0x13b   : > { %v633_v10 = vadd.f32 %v631_v60, %v627_v58  ;;  %v662_v15 = vadd.f32 %v660_v24, %v656_v59  ;;  %v691_v28 = vadd.f32 %v689_v25, %v685_v61  ;;  %v720_v29 = vadd.f32 %v718_v26, %v714_v62 }
 0x13c   : > { %v638_v30 = vadd.f32 %v636_v20, %v634_v13  ;;  %v667_v31 = vadd.f32 %v665_v21, %v663_v18  ;;  %v696_v32 = vadd.f32 %v694_v48, %v692_v14  ;;  %v725_v33 = vadd.f32 %v723_v55, %v721_v19 }
 0x13d   : > { %v637_v34 = vadd.f32 %v636_v20, %v633_v10  ;;  %v666_v35 = vadd.f32 %v665_v21, %v662_v15  ;;  %v695_v36 = vadd.f32 %v694_v48, %v691_v28  ;;  %v724_v39 = vadd.f32 %v723_v55, %v720_v29 }
 0x13e   : > { %641 = vst.msk [vmem:[%s394_s16 + $0x8] sm:$0xff] %vm639_vm4, %v638_v30  ;;  %932 = vst.msk [vmem:[%s394_s16 + $0x18] sm:$0xff] %vm639_vm4, %v667_v31 }
 0x13f   : > { %939 = vst.msk [vmem:[%s394_s16 + $0x28] sm:$0xff] %vm639_vm4, %v696_v32  ;;  %946 = vst.msk [vmem:[%s394_s16 + $0x38] sm:$0xff] %vm639_vm4, %v725_v33 }
 0x140   : > { %640 = vst.msk [vmem:[%s394_s16] sm:$0xff] %vm639_vm4, %v637_v34  ;;  %931 = vst.msk [vmem:[%s394_s16 + $0x10] sm:$0xff] %vm639_vm4, %v666_v35 }
 0x141   : > { %938 = vst.msk [vmem:[%s394_s16 + $0x20] sm:$0xff] %vm639_vm4, %v695_v36  ;;  %945 = vst.msk [vmem:[%s394_s16 + $0x30] sm:$0xff] %vm639_vm4, %v724_v39 }
 0x142   : > { %1191 = shalt.err (!%p1188_p5)
}
 0x143   : > { %s1192_s27 = scalar_lea.hbm %s1792_s21, 1024  ;;  %s1196_s8 = scalar_lea.hbm %s1856_s5, 2048 }
 0x144   : > { %p1193_p7 = scmp.ne.s32.totalorder %s1792_s21, %s1192_s27  ;;  %p1197_p10 = scmp.lt.u32.totalorder %s1792_s21, %s1856_s5 }
 0x145   : > { %p1198_p13 = scmp.lt.u32.totalorder %s1196_s8, %s1192_s27  ;;  %p1200_p2 = scmp.lt.u32.totalorder %s1192_s27, %s1792_s21 }
 0x146   : > { %p1194_p1 = pnand %p1193_p7, %p1901_p3 }
 0x147   : > { %p1199_p11 = por %p1198_p13, %p1197_p10 }
 0x148   : > { %p1195_p4 = pneg %p1194_p1 }
 0x149   : > { %p1201_p9 = por %p1200_p2, %p1199_p11 }
 0x14b   : > { %p1202_p6 = pnand %p1201_p9, %p1195_p4 }
 0x14d   : > { %1205 = shalt.err (!%p1202_p6)
}
 0x14e   : > { %s1285_s1 = smov 128   ;;  %s1286_s7 = smov 8  }
 0x14f   : > { %972 = dma.vmem_to_hbm [thread:$0]  (%p1901_p3), %s1794_s24, 1024, %s1792_s21, %s730_s22, %s1285_s1, %s1285_s1, %s1286_s7  }
 0x150 PF: > { %s760_s6 = sand.u32 1, %s1252_s18   ;;  %p1902_p8 = scmp.ne.s32.totalorder %s1886_s12, 0 }
 0x151   : > { %p1903_p12 = scmp.ge.s32.totalorder %s1272_s23, 2  ;;  %s761_s25 = scalar_lea.sflag [#allocation4], %s760_s6 }
 0x153   : > { %p992_p0 = pnand %p1903_p12, %p1902_p8 }
 0x155   : > { %1247 = dma.done.wait (!%p992_p0), %s761_s25, 1024  }
 0x156   : > { %1249 = vsyncadd (!%p992_p0), %s761_s25, 4294966272  ;;  %s26_s23 = sadd.s32 1, %s1272_s23   ;;  %s1904_s11 = sld [smem:[#allocation18_spill]] }
 0x157   : > { %p23_p5 = scmp.ge.s32.totalorder %s26_s23, 4   ;;  %s1905_s20 = sld [smem:[#allocation21_spill]] }
 0x158   : > { %s1906_s21 = sld [smem:[#allocation19_spill]]  ;;  %s1907_s22 = sld [smem:[#allocation20_spill]] }
 0x159   : > { %s1908_s18 = smov %s1256_s19  ;;  %25 = sbr.rel (!%p23_p5) target bundleno = 13 (0xd), region = 121 }
 0x15c   : > { %s1909_s19 = smov %s1904_s11 }
 0x160   :  { %766 = vsyncpa [#allocation3], 1 }
 0x161   :  { %768 = vsyncpa [#allocation3 + $0x1], 1 }
 0x162   :  { %769 = vsyncpa [#allocation7], 1 }
 0x163   :  { %771 = vsyncpa [#allocation7 + $0x1], 1 }
 0x164   :  { %772 = vsyncpa [#allocation4], 1 }
 0x165   :  { %774 = vsyncpa [#allocation4 + $0x1], 1 }
 0x166   :  { %775 = vsyncpa [#allocation5], 1 }
 0x167   :  { %777 = vsyncpa [#allocation5 + $0x1], 1 }
 0x168   :  { %778 = vsyncpa [#allocation11], 1 }

</bundles_post_ra>
